<compile_context>
chip_gen: v7x
topology: tpu7x:2x2x1
jax: 0.10.0
libtpu: 0.0.40
codegen_flags: <defaults>
</compile_context>

<pallas_src>
import functools

import jax
import jax.numpy as jnp
from jax.experimental import pallas as pl
from jax.experimental.pallas import tpu as pltpu

IGNORE_INDEX = 255
LANES = 128
TARGET_TILE_BYTES = 2 << 20        # ~2 MiB of logits (input dtype) per buffer
MAX_PIXELS_PER_BLOCK = 1 << 18     # bounds the in-kernel f32 temporaries
VMEM_LIMIT_BYTES = 40 * 1024 * 1024


def _focal_sum_kernel(o_ref, t_ref, out_ref, acc_ref, *, gamma, ignore_index,
                      hw, tile_p, n_total, bn, mask_tail_p, mask_tail_n):
    """One (batch-group, pixel-tile) grid step of the focal-loss reduction."""
    g = pl.program_id(0)           # batch group  (megacore-parallel)
    j = pl.program_id(1)           # pixel tile   (reduction axis)

    @pl.when(j == 0)
    def _():
        acc_ref[...] = jnp.zeros_like(acc_ref)

    logits = o_ref[...].astype(jnp.float32)            # (bn, C, TP) f32
    tgt = t_ref[...].astype(jnp.int32)                  # (bn, 1, TP)

    # Numerically stable softmax pieces along the class axis. exp(z) is reused
    # for both the partition function and p_t (no second exponential).
    m = jnp.max(logits, axis=1, keepdims=True)          # (bn, 1, TP)
    z = logits - m                                       # (bn, C, TP)
    ez = jnp.exp(z)                                      # (bn, C, TP)
    onehot = jax.lax.broadcasted_iota(jnp.int32, z.shape, 1) == tgt

    # Per-pixel quantities squeezed to (bn, TP): the elementwise tail runs on
    # sublane-dense vregs instead of a (.., 1, TP) 1-of-8-sublane shape.
    sum_exp = jnp.sum(ez, axis=1)                        # (bn, TP)
    z_t = jnp.sum(jnp.where(onehot, z, 0.0), axis=1)     # (bn, TP)
    ez_t = jnp.sum(jnp.where(onehot, ez, 0.0), axis=1)   # (bn, TP)

    logpt = jnp.log(sum_exp) - z_t                       # CE = -log p_t >= 0
    # p_t reuses exp(z); exact reciprocal keeps bit-closeness to the reference
    # (approx=True would save an EUP op at ~1e-4 relative accuracy).
    pt = ez_t * pl.reciprocal(sum_exp, approx=False)
    omp = 1.0 - pt
    if gamma == 2.0:
        focal_w = omp * omp
    elif gamma == 1.0:
        focal_w = omp
    elif gamma == 0.0:
        focal_w = jnp.ones_like(omp)
    else:
        focal_w = jnp.power(jnp.maximum(omp, 0.0), gamma)

    # Single fused mask right before the accumulate, so ignored pixels and
    # out-of-range (garbage) tail lanes never reach acc_ref.
    valid = tgt[:, 0, :] != ignore_index                 # (bn, TP)
    if mask_tail_p:
        lane = jax.lax.broadcasted_iota(jnp.int32, valid.shape, 1)
        valid = jnp.logical_and(valid, lane < (hw - j * tile_p))
    if mask_tail_n:
        row = jax.lax.broadcasted_iota(jnp.int32, valid.shape, 0)
        valid = jnp.logical_and(valid, (g * bn + row) < n_total)

    acc_ref[...] += jnp.where(valid, focal_w * logpt, 0.0)

    @pl.when(j == pl.num_programs(1) - 1)
    def _():
        part = jnp.sum(acc_ref[...], axis=(0, 1), keepdims=True)   # (1, 1)
        out_ref[...] = part.reshape(1, 1, 1)


@functools.partial(jax.jit,
                   static_argnames=("gamma", "ignore_index", "size_average"))
def focal_loss(output, target, gamma=2.0, ignore_index=IGNORE_INDEX,
               size_average=True):
    """Pallas implementation of FocalLoss.forward.

    output: (N, C, H, W) float logits (f32 or bf16).
    target: (N, H, W) integer class indices, `ignore_index` for ignored pixels.
    """
    # TODO(synk): alpha (per-class CE weight) not implemented; the module
    # default alpha=None is what this kernel reproduces.
    N, C, H, W = output.shape
    HW = H * W

    # Metadata-only reshapes: no HBM repacking, no wrapper-side dtype casts.
    o3 = output.reshape(N, C, HW)                  # (N, C, P)
    t3 = target.reshape(N, 1, HW)                  # (N, 1, P), native dtype

    # dtype-aware block sizing: ~TARGET_TILE_BYTES of logits per input buffer,
    # lane axis a multiple of 128 (or the full pixel extent); pixel count per
    # block capped so the in-kernel f32 temporaries stay inside scoped VMEM.
    itemsize = output.dtype.itemsize
    pix_budget = TARGET_TILE_BYTES // (itemsize * C)
    pix_budget = max(LANES, min(pix_budget, MAX_PIXELS_PER_BLOCK))

    if HW >= pix_budget:
        tile_p = max(LANES, (pix_budget // LANES) * LANES)
        bn = 1
    else:
        tile_p = HW                                 # full pixel axis per step
        bn = max(1, min(N, pix_budget // max(HW, 1)))
    grid_p = pl.cdiv(HW, tile_p)
    grid_n = pl.cdiv(N, bn)
    mask_tail_p = (HW % tile_p) != 0
    mask_tail_n = (N % bn) != 0

    kernel = functools.partial(
        _focal_sum_kernel, gamma=float(gamma), ignore_index=ignore_index,
        hw=HW, tile_p=tile_p, n_total=N, bn=bn,
        mask_tail_p=mask_tail_p, mask_tail_n=mask_tail_n)

    partials = pl.pallas_call(
        kernel,
        out_shape=jax.ShapeDtypeStruct((grid_n, 1, 1), jnp.float32),
        grid_spec=pltpu.PrefetchScalarGridSpec(
            num_scalar_prefetch=0,
            grid=(grid_n, grid_p),
            in_specs=[
                pl.BlockSpec((bn, C, tile_p), lambda n, j: (n, 0, j)),
                pl.BlockSpec((bn, 1, tile_p), lambda n, j: (n, 0, j)),
            ],
            out_specs=pl.BlockSpec((1, 1, 1), lambda n, j: (n, 0, 0)),
            scratch_shapes=[
                pltpu.VMEM((bn, tile_p), jnp.float32),  # per-lane partial sums
            ],
        ),
        compiler_params=pltpu.CompilerParams(
            dimension_semantics=("parallel", "arbitrary"),
            vmem_limit_bytes=VMEM_LIMIT_BYTES,
        ),
    )(o3, t3)

    s = jnp.sum(partials)
    if size_average:
        # PyTorch: CE(reduction='none') then .mean() -> divide by ALL pixels,
        # including ignored ones.
        return s / jnp.float32(N * HW)
    return s


def _reference(output, target, gamma=2.0, ignore_index=IGNORE_INDEX,
               size_average=True):
    """Pure-JAX reference matching the PyTorch FocalLoss module."""
    logp = jax.nn.log_softmax(output.astype(jnp.float32), axis=1)   # (N,C,H,W)
    valid = target != ignore_index
    t_safe = jnp.where(valid, target, 0)
    logpt_t = jnp.take_along_axis(logp, t_safe[:, None, :, :], axis=1)[:, 0]
    ce = jnp.where(valid, -logpt_t, 0.0)        # (N, H, W)
    pt = jnp.exp(-ce)
    loss = (1.0 - pt) ** gamma * ce
    return loss.mean() if size_average else loss.sum()


if __name__ == "__main__":
    key = jax.random.PRNGKey(0)
    k1, k2, k3 = jax.random.split(key, 3)

    B, C, H, W = 2, 4, 16, 16   # NCHW logits, (N, H, W) integer targets
    output = jax.random.normal(k1, (B, C, H, W), jnp.float32)
    target = jax.random.randint(k2, (B, H, W), 0, C, jnp.int32)
    ignore = jax.random.bernoulli(k3, 0.15, (B, H, W))
    target = jnp.where(ignore, jnp.int32(IGNORE_INDEX), target)

    loss = focal_loss(output, target)
    jax.block_until_ready(loss)

    ref = _reference(output, target)
    assert jnp.allclose(loss, ref, rtol=1e-5, atol=1e-5), (loss, ref)
    print("KERNEL_OK")
</pallas_src>

<mosaic_0001>
module attributes {stable_mosaic.version = 11 : i64} {
  func.func @_focal_sum_kernel(%arg0: i32, %arg1: i32, %arg2: memref<2x4x256xf32, #tpu.memory_space<vmem>>, %arg3: memref<2x1x256xi32, #tpu.memory_space<vmem>>, %arg4: memref<1x1x1xf32, #tpu.memory_space<vmem>>, %arg5: memref<2x256xf32, #tpu.memory_space<vmem>>) attributes {dimension_semantics = [#tpu.dimension_semantics<parallel>, #tpu.dimension_semantics<arbitrary>], iteration_bounds = array<i64: 1, 1>, scalar_prefetch = 0 : i64, scratch_operands = 1 : i64, tpu.core_type = #tpu.core_type<tc>, window_params = [{transform_indices = @transform_0, window_bounds = array<i64: 2, 4, 256>}, {transform_indices = @transform_1, window_bounds = array<i64: 2, 1, 256>}, {transform_indices = @transform_2, window_bounds = array<i64: 1, 1, 1>}]} {
    %c0_i32 = arith.constant 0 : i32
    %0 = arith.cmpi eq, %arg1, %c0_i32 : i32
    %1 = arith.extui %0 : i1 to i32
    %c0_i32_0 = arith.constant 0 : i32
    %2 = arith.cmpi ne, %1, %c0_i32_0 : i32
    scf.if %2 {
      %cst_19 = arith.constant 0.000000e+00 : f32
      %39 = vector.broadcast %cst_19 : f32 to vector<2x256xf32>
      %c0_20 = arith.constant 0 : index
      %c0_21 = arith.constant 0 : index
      %40 = vector.load %arg5[%c0_20, %c0_21] : memref<2x256xf32, #tpu.memory_space<vmem>>, vector<2x256xf32>
      tpu.vector_store %arg5[%c0_20, %c0_21], %39 {strides = array<i32>} : memref<2x256xf32, #tpu.memory_space<vmem>>, vector<2x256xf32>,
    } else {
    }
    %c0 = arith.constant 0 : index
    %c0_1 = arith.constant 0 : index
    %c0_2 = arith.constant 0 : index
    %3 = vector.load %arg2[%c0, %c0_1, %c0_2] : memref<2x4x256xf32, #tpu.memory_space<vmem>>, vector<2x4x256xf32>
    %c0_3 = arith.constant 0 : index
    %c0_4 = arith.constant 0 : index
    %c0_5 = arith.constant 0 : index
    %4 = vector.load %arg3[%c0_3, %c0_4, %c0_5] : memref<2x1x256xi32, #tpu.memory_space<vmem>>, vector<2x1x256xi32>
    %cst = arith.constant dense<0xFF800000> : vector<2x256xf32>
    %5 = vector.multi_reduction <maximumf>, %3, %cst [1] : vector<2x4x256xf32> to vector<2x256xf32>
    %6 = vector.shape_cast %5 : vector<2x256xf32> to vector<2x1x256xf32>
    %7 = vector.broadcast %6 : vector<2x1x256xf32> to vector<2x4x256xf32>
    %8 = arith.subf %3, %7 : vector<2x4x256xf32>
    %9 = math.exp %8 : vector<2x4x256xf32>
    %10 = tpu.iota {dimensions = array<i32: 1>} : vector<2x4x256xi32>
    %11 = vector.broadcast %4 : vector<2x1x256xi32> to vector<2x4x256xi32>
    %12 = arith.cmpi eq, %10, %11 : vector<2x4x256xi32>
    %cst_6 = arith.constant dense<0.000000e+00> : vector<2x256xf32>
    %13 = vector.multi_reduction <add>, %9, %cst_6 [1] : vector<2x4x256xf32> to vector<2x256xf32>
    %cst_7 = arith.constant 0.000000e+00 : f32
    %14 = vector.broadcast %cst_7 : f32 to vector<2x4x256xf32>
    %15 = arith.select %12, %8, %14 : vector<2x4x256xi1>, vector<2x4x256xf32>
    %cst_8 = arith.constant dense<0.000000e+00> : vector<2x256xf32>
    %16 = vector.multi_reduction <add>, %15, %cst_8 [1] : vector<2x4x256xf32> to vector<2x256xf32>
    %cst_9 = arith.constant 0.000000e+00 : f32
    %17 = vector.broadcast %cst_9 : f32 to vector<2x4x256xf32>
    %18 = arith.select %12, %9, %17 : vector<2x4x256xi1>, vector<2x4x256xf32>
    %cst_10 = arith.constant dense<0.000000e+00> : vector<2x256xf32>
    %19 = vector.multi_reduction <add>, %18, %cst_10 [1] : vector<2x4x256xf32> to vector<2x256xf32>
    %20 = math.log %13 : vector<2x256xf32>
    %21 = arith.subf %20, %16 : vector<2x256xf32>
    %22 = tpu.reciprocal %13 : vector<2x256xf32> -> vector<2x256xf32>
    %23 = arith.mulf %19, %22 : vector<2x256xf32>
    %cst_11 = arith.constant 1.000000e+00 : f32
    %24 = vector.broadcast %cst_11 : f32 to vector<2x256xf32>
    %25 = arith.subf %24, %23 : vector<2x256xf32>
    %26 = arith.mulf %25, %25 : vector<2x256xf32>
    %27 = vector.shape_cast %4 : vector<2x1x256xi32> to vector<2x256xi32>
    %c255_i32 = arith.constant 255 : i32
    %28 = vector.broadcast %c255_i32 : i32 to vector<2x256xi32>
    %29 = arith.cmpi ne, %27, %28 : vector<2x256xi32>
    %c0_12 = arith.constant 0 : index
    %c0_13 = arith.constant 0 : index
    %30 = vector.load %arg5[%c0_12, %c0_13] : memref<2x256xf32, #tpu.memory_space<vmem>>, vector<2x256xf32>
    %31 = arith.mulf %26, %21 : vector<2x256xf32>
    %cst_14 = arith.constant 0.000000e+00 : f32
    %32 = vector.broadcast %cst_14 : f32 to vector<2x256xf32>
    %33 = arith.select %29, %31, %32 : vector<2x256xi1>, vector<2x256xf32>
    %34 = arith.addf %30, %33 : vector<2x256xf32>
    %c0_15 = arith.constant 0 : index
    %c0_16 = arith.constant 0 : index
    %35 = vector.load %arg5[%c0_15, %c0_16] : memref<2x256xf32, #tpu.memory_space<vmem>>, vector<2x256xf32>
    tpu.vector_store %arg5[%c0_15, %c0_16], %34 {strides = array<i32>} : memref<2x256xf32, #tpu.memory_space<vmem>>, vector<2x256xf32>,
    %c0_i32_17 = arith.constant 0 : i32
    %36 = arith.cmpi eq, %arg1, %c0_i32_17 : i32
    %37 = arith.extui %36 : i1 to i32
    %c0_i32_18 = arith.constant 0 : i32
    %38 = arith.cmpi ne, %37, %c0_i32_18 : i32
    scf.if %38 {
      %c0_19 = arith.constant 0 : index
      %c0_20 = arith.constant 0 : index
      %39 = vector.load %arg5[%c0_19, %c0_20] : memref<2x256xf32, #tpu.memory_space<vmem>>, vector<2x256xf32>
      %40 = vector.shape_cast %39 : vector<2x256xf32> to vector<1x2x256xf32>
      %cst_21 = arith.constant dense<0.000000e+00> : vector<1xf32>
      %41 = vector.multi_reduction <add>, %40, %cst_21 [1, 2] : vector<1x2x256xf32> to vector<1xf32>
      %42 = vector.shape_cast %41 : vector<1xf32> to vector<1x1x1xf32>
      %43 = vector.extract %42[0, 0, 0] : f32 from vector<1x1x1xf32>
      %44 = vector.broadcast %43 : f32 to vector<1x1xf32>
      %45 = vector.shape_cast %44 : vector<1x1xf32> to vector<1x1x1xf32>
      %c0_22 = arith.constant 0 : index
      %c0_23 = arith.constant 0 : index
      %c0_24 = arith.constant 0 : index
      %46 = vector.load %arg4[%c0_22, %c0_23, %c0_24] : memref<1x1x1xf32, #tpu.memory_space<vmem>>, vector<1x1x1xf32>
      tpu.vector_store %arg4[%c0_22, %c0_23, %c0_24], %45 {strides = array<i32>} : memref<1x1x1xf32, #tpu.memory_space<vmem>>, vector<1x1x1xf32>,
    } else {
    }
    return
  }
  func.func @transform_0(%arg0: i32, %arg1: i32) -> (i32, i32, i32) {
    %c0_i32 = arith.constant 0 : i32
    %c0_i32_0 = arith.constant 0 : i32
    return %arg0, %c0_i32, %arg1 : i32, i32, i32
  }
  func.func @transform_1(%arg0: i32, %arg1: i32) -> (i32, i32, i32) {
    %c0_i32 = arith.constant 0 : i32
    %c0_i32_0 = arith.constant 0 : i32
    return %arg0, %c0_i32, %arg1 : i32, i32, i32
  }
  func.func @transform_2(%arg0: i32, %arg1: i32) -> (i32, i32, i32) {
    %c0_i32 = arith.constant 0 : i32
    %c0_i32_0 = arith.constant 0 : i32
    %c0_i32_1 = arith.constant 0 : i32
    return %arg0, %c0_i32, %c0_i32_0 : i32, i32, i32
  }
}

</mosaic_0001>

<bundles_post_ra>
// kernel: focal_loss.1
= control target key start
LH: loop header
LB: loop body
LE: loop exit
PB: predicated region body
PF: predicated region fallthrough
CT: control target
= control target key end

     0   :  { %vm27_vm0 = vcmask 1043456   ;;  %v380_v2 = vmov 0.0   ;;  %s475_s0 = inlined_call_operand.vmem [shape: f32[2,4,256], index: 0, kind: input, shape index: {}]   ;;  %s476_s1 = inlined_call_operand.vmem [shape: s32[2,1,256], index: 1, kind: input, shape index: {}]   ;;  %s477_s2 = inlined_call_operand.hbm [shape: f32[1,1,1], index: 2, kind: output, shape index: {}]  }
   0x1   :  { %v17_v0 = vld [vmem:[%s475_s0] sm:$0xff]  ;;  %v18_v1 = vld [vmem:[%s475_s0 + $0x8] sm:$0xff]  ;;  %16 = vst [vmem:[#allocation2] sm:$0xf] %v380_v2 }
   0x2   :  { %v23_v3 = vcombine.high %v17_v0, %v17_v0  ;;  %v24_v4 = vcombine.high %v18_v1, %v18_v1  ;;  %v28_v5 = vsel %vm27_vm0, %v17_v0, -inf  ;;  %v42_v6 = vsel %vm27_vm0, %v18_v1, -inf }
   0x3   :  { %7 = vsyncpa [#allocation4], 0  ;;  %v29_v7 = vrot.slane %v28_v5, 4  ;;  %v43_v8 = vrot.slane %v42_v6, 4  ;;  %v70_v19 = vlaneseq  ;;  %v415_v38 = vld [vmem:[%s476_s1] sm:$0x3] }
   0x4   :  { %v35_v9 = vsel %vm27_vm0, %v23_v3, -inf  ;;  %v49_v10 = vsel %vm27_vm0, %v24_v4, -inf  ;;  %v421_v42 = vld [vmem:[%s476_s1 + $0x2] sm:$0x3]  ;;  %vm224_vm5 = vcmp.ne.s32.totalorder %v415_v38, 255  ;;  %vm297_vm7 = vcmask 1041408  }
   0x5   :  { %v30_v11 = vmax.f32 %v28_v5, %v29_v7  ;;  %v36_v12 = vrot.slane %v35_v9, 4  ;;  %v44_v13 = vmax.f32 %v42_v6, %v43_v8  ;;  %v50_v14 = vrot.slane %v49_v10, 4  ;;  %s383_s1 = smov [#allocation3]  }
   0x6   :  { %v409_v28 = vshrl.u32 %v70_v19, 7  ;;  %vm225_vm6 = vcmp.ne.s32.totalorder %v421_v42, 255  ;;  %s319_s16 = sshll.u32 %s383_s1, 4  ;;  %vm311_vm8 = vcmask 0   ;;  %s320_s16 = int_to_ptr.vmem [resolvable:$true] %s319_s16 }
   0x7   :  { %v31_v15 = vrot.slane %v30_v11, 2  ;;  %v37_v16 = vmax.f32 %v35_v9, %v36_v12  ;;  %v45_v17 = vrot.slane %v44_v13, 2  ;;  %v51_v18 = vmax.f32 %v49_v10, %v50_v14  ;;  %s356_s18 = scalar_lea.vmem %s320_s16, 16  ;;  %s360_s19 = scalar_lea.vmem %s320_s16, 32 }
   0x8   :  { %v74_v37 = vsub.s32 0, %v409_v28  ;;  %v78_v41 = vsub.s32 1, %v409_v28  ;;  %p357_p0 = scmp.ne.s32.totalorder %s320_s16, %s356_s18  ;;  %p361_p1 = scmp.lt.s32.totalorder %s320_s16, %s320_s16 }
   0x9   :  { %v32_v20 = vmax.f32 %v30_v11, %v31_v15  ;;  %v38_v21 = vrot.slane %v37_v16, 2  ;;  %v46_v22 = vmax.f32 %v44_v13, %v45_v17  ;;  %v52_v23 = vrot.slane %v51_v18, 2  ;;  %p362_p2 = scmp.lt.s32.totalorder %s360_s19, %s356_s18 }
   0xa   :  { %v75_v45 = vrot.slane %v415_v38, %v74_v37  ;;  %v79_v46 = vrot.slane %v415_v38, %v78_v41  ;;  %v83_v47 = vrot.slane %v421_v42, %v74_v37  ;;  %v87_v49 = vrot.slane %v421_v42, %v78_v41 }
   0xb   :  { %v33_v24 = vrot.slane %v32_v20, 1  ;;  %v39_v25 = vmax.f32 %v37_v16, %v38_v21  ;;  %v47_v26 = vrot.slane %v46_v22, 1  ;;  %v53_v27 = vmax.f32 %v51_v18, %v52_v23  ;;  %p363_p3 = por %p362_p2, %p361_p1 }
   0xc   :  { %vm88_vm1 = vcmp.eq.s32.totalorder %v409_v28, %v75_v45  ;;  %vm89_vm2 = vcmp.eq.s32.totalorder %v409_v28, %v79_v46  ;;  %vm90_vm3 = vcmp.eq.s32.totalorder %v409_v28, %v83_v47  ;;  %vm91_vm4 = vcmp.eq.s32.totalorder %v409_v28, %v87_v49 }
   0xd   :  { %v34_v29 = vmax.f32 %v32_v20, %v33_v24  ;;  %v40_v30 = vrot.slane %v39_v25, 1  ;;  %v48_v31 = vmax.f32 %v46_v22, %v47_v26  ;;  %v54_v32 = vrot.slane %v53_v27, 1  ;;  %p364_p4 = pnand %p363_p3, %p357_p0 }
   0xf   :  { %v41_v33 = vmax.f32 %v39_v25, %v40_v30  ;;  %v55_v34 = vmax.f32 %v53_v27, %v54_v32 }
  0x11   :  { %v60_v35 = vcombine.low %v34_v29, %v41_v33  ;;  %v61_v36 = vcombine.low %v48_v31, %v55_v34 }
  0x13   :  { %v64_v39 = vsub.f32 %v17_v0, %v60_v35  ;;  %v65_v40 = vsub.f32 %v18_v1, %v61_v36 }
  0x15   :  { %v66_v43 = vmul.f32 1.442695, %v64_v39  ;;  %v68_v44 = vmul.f32 1.442695, %v65_v40  ;;  %v128_v48 = vcombine.high %v64_v39, %v64_v39  ;;  %v129_v50 = vcombine.high %v65_v40, %v65_v40 }
  0x16   :  { %v132_v51 = vsel %vm88_vm1, %v64_v39, 0.0  ;;  %v134_v53 = vsel %vm90_vm3, %v65_v40, 0.0 }
  0x17   :  { %336 = vpow2.f32 %v66_v43  ;;  %v133_v52 = vsel %vm89_vm2, %v128_v48, 0.0  ;;  %v136_v54 = vsel %vm27_vm0, %v132_v51, 0.0  ;;  %v135_v55 = vsel %vm91_vm4, %v129_v50, 0.0 }
  0x18   :  { %338 = vpow2.f32 %v68_v44  ;;  %v143_v56 = vsel %vm27_vm0, %v133_v52, 0.0  ;;  %v137_v57 = vrot.slane %v136_v54, 4  ;;  %v150_v58 = vsel %vm27_vm0, %v134_v53, 0.0 }
  0x19   :  { %v157_v60 = vsel %vm27_vm0, %v135_v55, 0.0  ;;  %v144_v0 = vrot.slane %v143_v56, 4  ;;  %v151_v4 = vrot.slane %v150_v58, 4 }
  0x1a   :  { %v138_v7 = vadd.f32 %v137_v57, %v136_v54  ;;  %v158_v8 = vrot.slane %v157_v60, 4 }
  0x1b   :  { %v145_v41 = vadd.f32 %v144_v0, %v143_v56  ;;  %v152_v46 = vadd.f32 %v151_v4, %v150_v58 }
  0x1c   :  { %v159_v50 = vadd.f32 %v158_v8, %v157_v60  ;;  %v139_v57 = vrot.slane %v138_v7, 2 }
  0x1d   :  { %v153_v56 = vrot.slane %v152_v46, 2 }
  0x1e   :  { %v160_v58 = vrot.slane %v159_v50, 2 }
  0x1f   :  { %v154_v4 = vadd.f32 %v153_v56, %v152_v46  ;;  %v382_v56 = vmov 1935823168  }
  0x21   :  { %v337_v59 = vpop.eup %336 }
  0x22   :  { %v339_v61 = vpop.eup %338  ;;  %v94_v62 = vcombine.high %v337_v59, %v337_v59  ;;  %v98_v63 = vsel %vm27_vm0, %v337_v59, 0.0  ;;  %v164_v12 = vsel %vm88_vm1, %v337_v59, 0.0 }
  0x23   :  { %v95_v1 = vcombine.high %v339_v61, %v339_v61  ;;  %v99_v2 = vrot.slane %v98_v63, 4  ;;  %v112_v3 = vsel %vm27_vm0, %v339_v61, 0.0  ;;  %v166_v16 = vsel %vm90_vm3, %v339_v61, 0.0 }
  0x24   :  { %v105_v5 = vsel %vm27_vm0, %v94_v62, 0.0  ;;  %v113_v6 = vrot.slane %v112_v3, 4  ;;  %v165_v15 = vsel %vm89_vm2, %v94_v62, 0.0  ;;  %v168_v20 = vsel %vm27_vm0, %v164_v12, 0.0 }
  0x25   :  { %v100_v9 = vadd.f32 %v99_v2, %v98_v63  ;;  %v106_v10 = vrot.slane %v105_v5, 4  ;;  %v119_v11 = vsel %vm27_vm0, %v95_v1, 0.0  ;;  %v167_v19 = vsel %vm91_vm4, %v95_v1, 0.0 }
  0x26   :  { %v114_v13 = vadd.f32 %v113_v6, %v112_v3  ;;  %v120_v14 = vrot.slane %v119_v11, 4  ;;  %v169_v23 = vrot.slane %v168_v20, 4  ;;  %v175_v24 = vsel %vm27_vm0, %v165_v15, 0.0 }
  0x27   :  { %v101_v17 = vrot.slane %v100_v9, 2  ;;  %v107_v18 = vadd.f32 %v106_v10, %v105_v5  ;;  %v176_v27 = vrot.slane %v175_v24, 4  ;;  %v182_v29 = vsel %vm27_vm0, %v166_v16, 0.0 }
  0x28   :  { %v115_v21 = vrot.slane %v114_v13, 2  ;;  %v121_v22 = vadd.f32 %v120_v14, %v119_v11  ;;  %v170_v32 = vadd.f32 %v169_v23, %v168_v20  ;;  %v183_v33 = vrot.slane %v182_v29, 4 }
  0x29   :  { %v102_v25 = vadd.f32 %v101_v17, %v100_v9  ;;  %v108_v26 = vrot.slane %v107_v18, 2  ;;  %v177_v36 = vadd.f32 %v176_v27, %v175_v24  ;;  %v189_v37 = vsel %vm27_vm0, %v167_v19, 0.0 }
  0x2a   :  { %v116_v30 = vadd.f32 %v115_v21, %v114_v13  ;;  %v122_v31 = vrot.slane %v121_v22, 2  ;;  %v184_v43 = vadd.f32 %v183_v33, %v182_v29  ;;  %v190_v47 = vrot.slane %v189_v37, 4 }
  0x2b   :  { %v103_v34 = vrot.slane %v102_v25, 1  ;;  %v109_v35 = vadd.f32 %v108_v26, %v107_v18  ;;  %v171_v51 = vrot.slane %v170_v32, 2  ;;  %v178_v53 = vrot.slane %v177_v36, 2 }
  0x2c   :  { %v117_v39 = vrot.slane %v116_v30, 1  ;;  %v123_v40 = vadd.f32 %v122_v31, %v121_v22  ;;  %v191_v54 = vadd.f32 %v190_v47, %v189_v37  ;;  %v185_v59 = vrot.slane %v184_v43, 2 }
  0x2d   :  { %v104_v44 = vadd.f32 %v103_v34, %v102_v25  ;;  %v110_v45 = vrot.slane %v109_v35, 1  ;;  %v146_v61 = vrot.slane %v145_v41, 2  ;;  %v172_v63 = vadd.f32 %v171_v51, %v170_v32 }
  0x2e   :  { %v118_v48 = vadd.f32 %v117_v39, %v116_v30  ;;  %v124_v49 = vrot.slane %v123_v40, 1  ;;  %v192_v62 = vrot.slane %v191_v54, 2  ;;  %v179_v0 = vadd.f32 %v178_v53, %v177_v36 }
  0x2f   :  { %v111_v52 = vadd.f32 %v110_v45, %v109_v35  ;;  %340 = vlog2.f32 %v104_v44  ;;  %v140_v1 = vadd.f32 %v139_v57, %v138_v7  ;;  %v186_v60 = vadd.f32 %v185_v59, %v184_v43 }
  0x30   :  { %v125_v55 = vadd.f32 %v124_v49, %v123_v40  ;;  %342 = vlog2.f32 %v118_v48  ;;  %v147_v2 = vadd.f32 %v146_v61, %v145_v41  ;;  %v193_v3 = vadd.f32 %v192_v62, %v191_v54 }
  0x31   :  { %344 = vlog2.f32 %v111_v52  ;;  %v173_v5 = vrot.slane %v172_v63, 1  ;;  %v161_v6 = vadd.f32 %v160_v58, %v159_v50  ;;  %v180_v8 = vrot.slane %v179_v0, 1 }
  0x32   :  { %346 = vlog2.f32 %v125_v55  ;;  %v141_v9 = vrot.slane %v140_v1, 1  ;;  %v187_v10 = vrot.slane %v186_v60, 1  ;;  %v148_v12 = vrot.slane %v147_v2, 1 }
  0x33   :  { %348 = vrcp.f32 %v104_v44  ;;  %v194_v13 = vrot.slane %v193_v3, 1  ;;  %v155_v15 = vrot.slane %v154_v4, 1  ;;  %v174_v16 = vadd.f32 %v173_v5, %v172_v63 }
  0x34   :  { %350 = vrcp.f32 %v111_v52  ;;  %v162_v7 = vrot.slane %v161_v6, 1  ;;  %v181_v18 = vadd.f32 %v180_v8, %v179_v0  ;;  %v142_v20 = vadd.f32 %v141_v9, %v140_v1 }
  0x35   :  { %352 = vrcp.f32 %v118_v48  ;;  %v188_v21 = vadd.f32 %v187_v10, %v186_v60  ;;  %v149_v24 = vadd.f32 %v148_v12, %v147_v2  ;;  %v195_v25 = vadd.f32 %v194_v13, %v193_v3 }
  0x36   :  { %354 = vrcp.f32 %v125_v55  ;;  %v381_v27 = vmov 1966171168   ;;  %v156_v31 = vadd.f32 %v155_v15, %v154_v4  ;;  %v163_v35 = vadd.f32 %v162_v7, %v161_v6 }
  0x37   :  { %v237_v29 = vunpack.c.l.s4 %v381_v27  ;;  %v273_v63 = vunpack.c.l.s4 %v382_v56 }
  0x39   :  { %v341_v11 = vpop.eup %340  ;;  %v238_v47 = vunpack.c.0.s8 %v237_v29  ;;  %v274_v2 = vunpack.c.0.s8 %v273_v63 }
  0x3a   :  { %v343_v14 = vpop.eup %342  ;;  %v197_v22 = vmul.f32 0.6931472, %v341_v11  ;;  %v226_v11 = vld [vmem:[#allocation2] sm:$0xf] }
  0x3b   :  { %v345_v17 = vpop.eup %344  ;;  %v201_v32 = vmul.f32 0.6931472, %v343_v14  ;;  %v241_v61 = vsub.s32 %v238_v47, %v409_v28  ;;  %v277_v8 = vsub.s32 %v274_v2, %v409_v28 }
  0x3c   :  { %v347_v19 = vpop.eup %346  ;;  %v199_v26 = vmul.f32 0.6931472, %v345_v17  ;;  %v204_v40 = vsub.f32 %v197_v22, %v142_v20 }
  0x3d   :  { %v349_v23 = vpop.eup %348  ;;  %v203_v36 = vmul.f32 0.6931472, %v347_v19  ;;  %v206_v48 = vsub.f32 %v201_v32, %v156_v31 }
  0x3e   :  { %v351_v30 = vpop.eup %350  ;;  %v212_v33 = vmul.f32 %v349_v23, %v174_v16  ;;  %v205_v44 = vsub.f32 %v199_v26, %v149_v24 }
  0x3f   :  { %v353_v34 = vpop.eup %352  ;;  %v213_v37 = vmul.f32 %v351_v30, %v181_v18  ;;  %v207_v51 = vsub.f32 %v203_v36, %v163_v35 }
  0x40   :  { %v355_v39 = vpop.eup %354  ;;  %v214_v41 = vmul.f32 %v353_v34, %v188_v21  ;;  %v216_v43 = vsub.f32 1.0, %v212_v33 }
  0x41   :  { %v215_v45 = vmul.f32 %v355_v39, %v195_v25  ;;  %v217_v46 = vsub.f32 1.0, %v213_v37 }
  0x42   :  { %v218_v49 = vsub.f32 1.0, %v214_v41  ;;  %v220_v50 = vmul.f32 %v216_v43, %v216_v43 }
  0x43   :  { %v219_v52 = vsub.f32 1.0, %v215_v45  ;;  %v221_v53 = vmul.f32 %v217_v46, %v217_v46 }
  0x44   :  { %v222_v54 = vmul.f32 %v218_v49, %v218_v49  ;;  %v227_v55 = vmul.f32 %v220_v50, %v204_v40 }
  0x45   :  { %v223_v57 = vmul.f32 %v219_v52, %v219_v52  ;;  %v228_v59 = vmul.f32 %v221_v53, %v205_v44 }
  0x46   :  { %v229_v62 = vmul.f32 %v222_v54, %v206_v48 }
  0x47   :  { %v230_v58 = vmul.f32 %v223_v57, %v207_v51  ;;  %v235_v0 = vcombine.low %v227_v55, %v228_v59 }
  0x49   :  { %v242_v1 = vrot.slane %v235_v0, %v241_v61  ;;  %v250_v60 = vcombine.low %v229_v62, %v230_v58 }
  0x4b   :  { %v249_v3 = vrot.slane %v242_v1, %v241_v61  ;;  %v257_v4 = vrot.slane %v250_v60, %v241_v61 }
  0x4d   :  { %v264_v5 = vrot.slane %v257_v4, %v241_v61  ;;  %v267_v6 = vsel %vm224_vm5, %v249_v3, 0.0 }
  0x4f   :  { %v268_v9 = vsel %vm225_vm6, %v264_v5, 0.0 }
  0x50   :  { %v271_v10 = vcombine.low %v267_v6, %v268_v9 }
  0x52   :  { %v278_v12 = vrot.slane %v271_v10, %v277_v8 }
  0x54   :  { %v280_v13 = vadd.f32 %v278_v12, %v226_v11 }
  0x56   :  { %281 = vst [vmem:[#allocation2] sm:$0xf] %v280_v13 }
  0x5d   :  { %v327_v14 = vld.sshfl [vmem:[#allocation2] sm:$0x33 pattern:$0x76325410] }
  0x5e   :  { %v294_v15 = vcombine.high %v327_v14, %v327_v14  ;;  %v298_v16 = vsel %vm297_vm7, %v327_v14, 0.0 }
  0x60   :  { %v299_v38 = vsel %vm297_vm7, %v294_v15, 0.0 }
  0x61   :  { %v300_v17 = vadd.f32 %v299_v38, %v298_v16 }
  0x63   :  { %301 = vadd.xlane.f32.xlu0 %v300_v17 }
  0xf0   :  { %v302_v7 = vpop.xlane.xlu0 %301 }
  0xf1   :  { %v303_v18 = vrot.slane %v302_v7, 4 }
  0xf3   :  { %v304_v42 = vadd.f32 %v303_v18, %v302_v7 }
  0xf5   :  { %v305_v19 = vrot.slane %v304_v42, 2 }
  0xf7   :  { %v306_v20 = vadd.f32 %v305_v19, %v304_v42 }
  0xf9   :  { %v307_v21 = vrot.slane %v306_v20, 1 }
  0xfb   :  { %v308_v28 = vadd.f32 %v307_v21, %v306_v20 }
  0xfd   :  { %328 = vpush %v308_v28 }
 0x12e   :  { %s329_s17 = spop %328 }
 0x12f   :  { %v310_v22 = vstv %s329_s17 }
 0x130   :  { %312 = vst.msk [vmem:[#allocation3] sm:$0x1] %vm311_vm8, %v310_v22 }
 0x131   :  { %367 = shalt.err (!%p364_p4)
}
 0x132   :  { %s368_s22 = scalar_lea.hbm %s477_s2, 16 }
 0x133   :  { %p369_p5 = scmp.ne.s32.totalorder %s477_s2, %s368_s22  ;;  %p372_p6 = scmp.lt.u32.totalorder %s368_s22, %s477_s2 }
 0x135   :  { %p374_p7 = pnand %p372_p6, %p369_p5 }
 0x137   :  { %377 = shalt.err (!%p374_p7)
}
 0x138   :  { %322 = dma.vmem_to_hbm [thread:$0]  %s320_s16, 16, %s477_s2, [#allocation4]  }
 0x139   :  { %378 = dma.done.wait [#allocation4], 16  }
 0x13a   :  { %379 = vsyncadd [#allocation4], 4294967280 }
 0x13b   :  { %326 = vsyncpa [#allocation4], 1 }

</bundles_post_ra>
